<compile_context>
chip_gen: v7x
topology: tpu7x:2x2x1
jax: 0.10.0
libtpu: 0.0.40
codegen_flags: <defaults>
</compile_context>

<pallas_src>
import functools

import jax
import jax.numpy as jnp
from jax import lax
from jax.experimental import pallas as pl
from jax.experimental.pallas import tpu as pltpu

EPS = 1e-5


def _bn_kernel(scale_smem, shift_smem, x_ref, o_ref, *, C, TR):
    # scale_smem / shift_smem: (C,) float32 in SMEM (scalar prefetch)
    # x_ref / o_ref:           (TR, TL) VMEM tiles of the (N*C, H*W) slab
    i = pl.program_id(0)
    row0 = i * TR  # global row offset of this tile

    # Per-row channel index: (global_row % C), built as a (TR, 1) column.
    local = lax.broadcasted_iota(jnp.int32, (TR, 1), 0)
    ch = (row0 + local) % C

    # Expand per-channel SMEM scalars to per-row (TR, 1) columns.  C is a
    # static Python int (3), so this loop fully unrolls at trace time into a
    # few compare+select VPU ops on a tiny column.
    scale = jnp.full((TR, 1), scale_smem[0], jnp.float32)
    shift = jnp.full((TR, 1), shift_smem[0], jnp.float32)
    for c in range(1, C):
        m = ch == c
        scale = jnp.where(m, scale_smem[c], scale)
        shift = jnp.where(m, shift_smem[c], shift)

    x = x_ref[...].astype(jnp.float32)
    o_ref[...] = (x * scale + shift).astype(o_ref.dtype)


def batchnorm2d_pallas(x, gamma, beta, running_mean, running_var, eps=EPS,
                       row_tile=256, col_tile=2048):
    """Inference-mode BatchNorm2d over NCHW input using a Pallas TPU kernel."""
    N, C, H, W = x.shape

    # Fold affine + running stats into per-channel scale/shift (plain JAX glue,
    # O(C) work -- not worth a kernel).
    scale_c = (gamma / jnp.sqrt(running_var + eps)).astype(jnp.float32)   # (C,)
    shift_c = (beta - running_mean * scale_c).astype(jnp.float32)         # (C,)

    R, L = N * C, H * W
    x2d = x.reshape(R, L)

    # Tile sizes: full extent if small (allowed even if not (8,128)-aligned),
    # otherwise (8,128)-aligned tiles; pl.cdiv grid handles ragged edges.
    TR = R if R <= row_tile else (row_tile // 8) * 8
    TL = L if L <= col_tile else (col_tile // 128) * 128
    grid = (pl.cdiv(R, TR), pl.cdiv(L, TL))

    kernel = functools.partial(_bn_kernel, C=C, TR=TR)

    out2d = pl.pallas_call(
        kernel,
        out_shape=jax.ShapeDtypeStruct((R, L), x.dtype),
        grid_spec=pltpu.PrefetchScalarGridSpec(
            num_scalar_prefetch=2,   # scale_c, shift_c -> SMEM
            grid=grid,
            in_specs=[
                pl.BlockSpec((TR, TL), lambda i, j, s_ref, t_ref: (i, j)),
            ],
            out_specs=pl.BlockSpec((TR, TL), lambda i, j, s_ref, t_ref: (i, j)),
        ),
        compiler_params=pltpu.CompilerParams(
            # Both axes independent: lets Mosaic shard across the two
            # TensorCores on v7x; harmless on v5e/v6e.
            dimension_semantics=("parallel", "parallel")),
    )(scale_c, shift_c, x2d)

    return out2d.reshape(N, C, H, W)


def m_quant_fullweight_forward(x, params):
    # self.quant: QuantStub is an identity pass-through before conversion.
    # self.conv1 = nn.Sequential(nn.BatchNorm2d(3)), eval-mode semantics.
    y = batchnorm2d_pallas(
        x,
        params["gamma"], params["beta"],
        params["running_mean"], params["running_var"],
    )
    # self.dequant: DeQuantStub is an identity pass-through before conversion.
    return y


def _make_params(key, C):
    k_g, k_b, k_m, k_v = jax.random.split(key, 4)
    return {
        "gamma": 1.0 + 0.1 * jax.random.normal(k_g, (C,), dtype=jnp.float32),
        "beta": 0.1 * jax.random.normal(k_b, (C,), dtype=jnp.float32),
        "running_mean": 0.05 * jax.random.normal(k_m, (C,), dtype=jnp.float32),
        "running_var": jnp.abs(1.0 + 0.1 * jax.random.normal(
            k_v, (C,), dtype=jnp.float32)),
    }


def _reference(x, params):
    scale = params["gamma"] / jnp.sqrt(params["running_var"] + EPS)
    shift = params["beta"] - params["running_mean"] * scale
    return x * scale[None, :, None, None] + shift[None, :, None, None]


if __name__ == "__main__":
    key = jax.random.PRNGKey(0)
    k_x, k_p, k_x2 = jax.random.split(key, 3)

    # Primary check: small shape matching the module (BatchNorm2d(3) -> C=3).
    N, C, H, W = 2, 3, 16, 16
    x = jax.random.normal(k_x, (N, C, H, W), dtype=jnp.float32)
    params = _make_params(k_p, C)

    out = m_quant_fullweight_forward(x, params)
    out = jax.block_until_ready(out)
    assert out.shape == (N, C, H, W)
    assert jnp.allclose(out, _reference(x, params), atol=1e-5, rtol=1e-5)

    # Secondary check: larger spatial extent to exercise the tiled (multi-step
    # grid) path of the kernel.
    x2 = jax.random.normal(k_x2, (4, C, 64, 128), dtype=jnp.float32)
    out2 = jax.block_until_ready(m_quant_fullweight_forward(x2, params))
    assert jnp.allclose(out2, _reference(x2, params), atol=1e-5, rtol=1e-5)

    print("KERNEL_OK")
</pallas_src>

<mosaic_0001>
module attributes {stable_mosaic.version = 11 : i64} {
  func.func @_bn_kernel(%arg0: i32, %arg1: i32, %arg2: memref<3xf32, #tpu.memory_space<smem>>, %arg3: memref<3xf32, #tpu.memory_space<smem>>, %arg4: memref<6x256xf32, #tpu.memory_space<vmem>>, %arg5: memref<6x256xf32, #tpu.memory_space<vmem>>) attributes {dimension_semantics = [#tpu.dimension_semantics<parallel>, #tpu.dimension_semantics<parallel>], iteration_bounds = array<i64: 1, 1>, scalar_prefetch = 2 : i64, scratch_operands = 0 : i64, tpu.core_type = #tpu.core_type<tc>, window_params = [{transform_indices = @transform_0, window_bounds = array<i64: 6, 256>}, {transform_indices = @transform_1, window_bounds = array<i64: 6, 256>}]} {
    %c6_i32 = arith.constant 6 : i32
    %0 = arith.muli %arg0, %c6_i32 : i32
    %1 = tpu.iota {dimensions = array<i32: 0>} : vector<6x1xi32>
    %2 = vector.broadcast %0 : i32 to vector<6x1xi32>
    %3 = arith.addi %2, %1 : vector<6x1xi32>
    %c3_i32 = arith.constant 3 : i32
    %c0_i32 = arith.constant 0 : i32
    %4 = arith.cmpi eq, %c3_i32, %c0_i32 : i32
    %c1_i32 = arith.constant 1 : i32
    %5 = arith.select %4, %c1_i32, %c3_i32 : i32
    %6 = vector.broadcast %5 : i32 to vector<6x1xi32>
    %7 = arith.remsi %3, %6 : vector<6x1xi32>
    %c0_i32_0 = arith.constant 0 : i32
    %8 = vector.broadcast %c0_i32_0 : i32 to vector<6x1xi32>
    %9 = arith.cmpi ne, %7, %8 : vector<6x1xi32>
    %c0_i32_1 = arith.constant 0 : i32
    %10 = vector.broadcast %c0_i32_1 : i32 to vector<6x1xi32>
    %11 = arith.cmpi slt, %7, %10 : vector<6x1xi32>
    %c0_i32_2 = arith.constant 0 : i32
    %12 = arith.cmpi slt, %5, %c0_i32_2 : i32
    %13 = vector.broadcast %12 : i1 to vector<6x1xi1>
    %14 = vector.broadcast %13 : vector<6x1xi1> to vector<6x1xi1>
    %15 = arith.xori %11, %14 : vector<6x1xi1>
    %16 = arith.andi %15, %9 : vector<6x1xi1>
    %17 = vector.broadcast %5 : i32 to vector<6x1xi32>
    %18 = arith.addi %7, %17 : vector<6x1xi32>
    %19 = arith.select %16, %18, %7 : vector<6x1xi1>, vector<6x1xi32>
    %c0 = arith.constant 0 : index
    %20 = memref.load %arg2[%c0] : memref<3xf32, #tpu.memory_space<smem>>
    %21 = vector.broadcast %20 : f32 to vector<6x1xf32>
    %c0_3 = arith.constant 0 : index
    %22 = memref.load %arg3[%c0_3] : memref<3xf32, #tpu.memory_space<smem>>
    %23 = vector.broadcast %22 : f32 to vector<6x1xf32>
    %c1_i32_4 = arith.constant 1 : i32
    %24 = vector.broadcast %c1_i32_4 : i32 to vector<6x1xi32>
    %25 = arith.cmpi eq, %19, %24 : vector<6x1xi32>
    %c1 = arith.constant 1 : index
    %26 = memref.load %arg2[%c1] : memref<3xf32, #tpu.memory_space<smem>>
    %27 = vector.broadcast %26 : f32 to vector<6x1xf32>
    %28 = arith.select %25, %27, %21 : vector<6x1xi1>, vector<6x1xf32>
    %c1_5 = arith.constant 1 : index
    %29 = memref.load %arg3[%c1_5] : memref<3xf32, #tpu.memory_space<smem>>
    %30 = vector.broadcast %29 : f32 to vector<6x1xf32>
    %31 = arith.select %25, %30, %23 : vector<6x1xi1>, vector<6x1xf32>
    %c2_i32 = arith.constant 2 : i32
    %32 = vector.broadcast %c2_i32 : i32 to vector<6x1xi32>
    %33 = arith.cmpi eq, %19, %32 : vector<6x1xi32>
    %c2 = arith.constant 2 : index
    %34 = memref.load %arg2[%c2] : memref<3xf32, #tpu.memory_space<smem>>
    %35 = vector.broadcast %34 : f32 to vector<6x1xf32>
    %36 = arith.select %33, %35, %28 : vector<6x1xi1>, vector<6x1xf32>
    %c2_6 = arith.constant 2 : index
    %37 = memref.load %arg3[%c2_6] : memref<3xf32, #tpu.memory_space<smem>>
    %38 = vector.broadcast %37 : f32 to vector<6x1xf32>
    %39 = arith.select %33, %38, %31 : vector<6x1xi1>, vector<6x1xf32>
    %c0_7 = arith.constant 0 : index
    %c0_8 = arith.constant 0 : index
    %40 = vector.load %arg4[%c0_7, %c0_8] : memref<6x256xf32, #tpu.memory_space<vmem>>, vector<6x256xf32>
    %41 = vector.broadcast %36 : vector<6x1xf32> to vector<6x256xf32>
    %42 = arith.mulf %40, %41 : vector<6x256xf32>
    %43 = vector.broadcast %39 : vector<6x1xf32> to vector<6x256xf32>
    %44 = arith.addf %42, %43 : vector<6x256xf32>
    %c0_9 = arith.constant 0 : index
    %c0_10 = arith.constant 0 : index
    %45 = vector.load %arg5[%c0_9, %c0_10] : memref<6x256xf32, #tpu.memory_space<vmem>>, vector<6x256xf32>
    tpu.vector_store %arg5[%c0_9, %c0_10], %44 {strides = array<i32>} : memref<6x256xf32, #tpu.memory_space<vmem>>, vector<6x256xf32>,
    return
  }
  func.func @transform_0(%arg0: i32, %arg1: i32, %arg2: memref<3xf32, #tpu.memory_space<smem>>, %arg3: memref<3xf32, #tpu.memory_space<smem>>) -> (i32, i32) {
    %c0_i32 = arith.constant 0 : i32
    return %arg0, %arg1 : i32, i32
  }
  func.func @transform_1(%arg0: i32, %arg1: i32, %arg2: memref<3xf32, #tpu.memory_space<smem>>, %arg3: memref<3xf32, #tpu.memory_space<smem>>) -> (i32, i32) {
    %c0_i32 = arith.constant 0 : i32
    return %arg0, %arg1 : i32, i32
  }
}

</mosaic_0001>

<bundles_post_ra>
// kernel: tpu_custom_call.1
= control target key start
LH: loop header
LB: loop body
LE: loop exit
PB: predicated region body
PF: predicated region fallthrough
CT: control target
= control target key end

     0   :  { %s242_s0 = inlined_call_operand.hbm [shape: f32[3], index: 0, kind: input, shape index: {}]   ;;  %s243_s2 = inlined_call_operand.hbm [shape: f32[6,256], index: 2, kind: input, shape index: {}]   ;;  %s244_s3 = inlined_call_operand.hbm [shape: f32[6,256], index: 3, kind: output, shape index: {}]   ;;  %s245_s1 = inlined_call_operand.vmem [shape: f32[3], index: 1, kind: input, shape index: {}]  }
   0x1   :  { %s103_s14 = scalar_lea.hbm %s242_s0, 16 }
   0x2   :  { %p104_p0 = scmp.ne.s32.totalorder %s242_s0, %s103_s14  ;;  %p107_p1 = scmp.lt.u32.totalorder %s103_s14, %s242_s0 }
   0x4   :  { %p109_p2 = pnand %p107_p1, %p104_p0 }
   0x6   :  { %112 = shalt.err (!%p109_p2)  }
   0x7   :  { %s175_s19 = smov [#allocation3]   ;;  %s10_s24 = sshll.u32 %s245_s1, 4  ;;  %s11_s24 = int_to_ptr.vmem [resolvable:$true] %s10_s24 }
   0x8   :  { %9 = dma.hbm_to_smem %s242_s0, 16, %s175_s19, [#allocation2] }
   0x9   :  { %s113_s25 = scalar_lea.vmem %s11_s24, 16  ;;  %p118_p4 = scmp.lt.s32.totalorder %s11_s24, %s11_s24 }
   0xa   :  { %p114_p3 = scmp.ne.s32.totalorder %s11_s24, %s113_s25  ;;  %p119_p5 = scmp.lt.s32.totalorder %s113_s25, %s113_s25 }
   0xc   :  { %p120_p6 = por %p119_p5, %p118_p4 }
   0xe   :  { %p121_p7 = pnand %p120_p6, %p114_p3 }
  0x10   :  { %124 = shalt.err (!%p121_p7)  }
  0x11   :  { %s176_s26 = smov [#allocation4]  }
  0x12   :  { %13 = dma.vmem_to_smem %s11_s24, 16, %s176_s26, [#allocation2] }
  0x13   :  { %169 = dma.done.wait [#allocation2], 32 }
  0x14   :  { %170 = vsyncadd [#allocation2], 4294967264 }
  0x15   :  { %15 = sfence }
  0x16   :  { %16 = vsyncpa [#allocation6], 0 }
  0x17   :  { %17 = vsyncpa [#allocation7], 0  ;;  %s177_s0 = smov [#allocation5]   ;;  %s125_s29 = scalar_lea.hbm %s243_s2, 256 }
  0x18   :  { %s24_s27 = sshll.u32 %s177_s0, 4  ;;  %p126_p8 = scmp.ne.s32.totalorder %s243_s2, %s125_s29  ;;  %s25_s27 = int_to_ptr.vmem [resolvable:$true] %s24_s27 }
  0x19   :  { %p129_p9 = scmp.lt.u32.totalorder %s125_s29, %s243_s2 }
  0x1b   :  { %p131_p10 = pnand %p129_p9, %p126_p8 }
  0x1d   :  { %134 = shalt.err (!%p131_p10)
}
  0x1e   :  { %s135_s7 = scalar_lea.vmem %s25_s27, 256  ;;  %p140_p12 = scmp.lt.s32.totalorder %s25_s27, %s25_s27 }
  0x1f   :  { %p136_p11 = scmp.ne.s32.totalorder %s25_s27, %s135_s7  ;;  %p141_p13 = scmp.lt.s32.totalorder %s135_s7, %s135_s7 }
  0x21   :  { %p142_p0 = por %p141_p13, %p140_p12 }
  0x23   :  { %p143_p1 = pnand %p142_p0, %p136_p11 }
  0x25   :  { %146 = shalt.err (!%p143_p1)
}
  0x26   :  { %27 = dma.hbm_to_vmem [thread:$0]  %s243_s2, 256, %s25_s27, [#allocation6]  }
  0x27   :  { %171 = dma.done.wait [#allocation6], 256  }
  0x28   :  { %172 = vsyncadd [#allocation6], 4294967040  ;;  %v32_v0 = vlaneseq  ;;  %s52_s10 = sld [smem:[#allocation3]]  ;;  %s93_s12 = sld [smem:[#allocation3 + $0x1]]  ;;  %v70_v15 = vld [vmem:[#allocation5] sm:$0x3f] }
  0x29   :  { %s54_s11 = sld [smem:[#allocation4]]  ;;  %s94_s13 = sld [smem:[#allocation4 + $0x1]]  ;;  %v71_v16 = vld [vmem:[#allocation5 + $0x8] sm:$0x3f] }
  0x2a   :  { %v33_v1 = vshrl.u32 %v32_v0, 7  ;;  %s95_s14 = sld [smem:[#allocation3 + $0x2]]  ;;  %s178_s2 = smov [#allocation8]  }
  0x2b   :  { %s96_s15 = sld [smem:[#allocation4 + $0x2]]  ;;  %s84_s16 = sshll.u32 %s178_s2, 4  ;;  %s85_s16 = int_to_ptr.vmem [resolvable:$true] %s84_s16 }
  0x2c   :  { %v226_v2 = vmul.u32.u64.low 2863311531, %v33_v1  ;;  %v227_v3 = vmul.u32.u64.high 2863311531, %v33_v1, %v226_v2  ;;  %s147_s17 = scalar_lea.vmem %s85_s16, 256  ;;  %p152_p3 = scmp.lt.s32.totalorder %s85_s16, %s85_s16 }
  0x2d   :  { %p148_p2 = scmp.ne.s32.totalorder %s85_s16, %s147_s17  ;;  %p153_p4 = scmp.lt.s32.totalorder %s147_s17, %s147_s17 }
  0x2e   :  { %v42_v4 = vshrl.u32 %v227_v3, 1  ;;  %v53_v8 = vstv %s52_s10  ;;  %v58_v10 = vstv %s93_s12 }
  0x2f   :  { %v55_v9 = vstv %s54_s11  ;;  %v61_v11 = vstv %s94_s13  ;;  %p154_p5 = por %p153_p4, %p152_p3 }
  0x30   :  { %v43_v5 = vmul.u32 3, %v42_v4  ;;  %v65_v13 = vstv %s95_s14 }
  0x31   :  { %v68_v14 = vstv %s96_s15  ;;  %p155_p6 = pnand %p154_p5, %p148_p2 }
  0x32   :  { %v44_v6 = vsub.s32 %v33_v1, %v43_v5 }
  0x34   :  { %vm47_vm0 = vcmp.ne.s32.totalorder %v44_v6, 0  ;;  %vm48_vm1 = vcmp.lt.s32.totalorder %v44_v6, 0  ;;  %v50_v7 = vadd.s32 3, %v44_v6 }
  0x35   :  { %vm49_vm2 = vmand %vm48_vm1, %vm47_vm0 }
  0x36   :  { %v51_v12 = vsel %vm49_vm2, %v50_v7, %v44_v6 }
  0x37   :  { %vm56_vm3 = vcmp.eq.s32.totalorder %v51_v12, 1  ;;  %vm63_vm4 = vcmp.eq.s32.totalorder %v51_v12, 2 }
  0x38   :  { %v59_v17 = vsel %vm56_vm3, %v58_v10, %v53_v8  ;;  %v62_v18 = vsel %vm56_vm3, %v61_v11, %v55_v9 }
  0x39   :  { %v66_v19 = vsel %vm63_vm4, %v65_v13, %v59_v17  ;;  %v69_v20 = vsel %vm63_vm4, %v68_v14, %v62_v18 }
  0x3a   :  { %v72_v21 = vmul.f32 %v70_v15, %v66_v19  ;;  %v73_v22 = vmul.f32 %v71_v16, %v66_v19 }
  0x3c   :  { %v74_v23 = vadd.f32 %v72_v21, %v69_v20  ;;  %v75_v24 = vadd.f32 %v73_v22, %v69_v20 }
  0x3e   :  { %76 = vst [vmem:[#allocation8] sm:$0x3f] %v74_v23  ;;  %77 = vst [vmem:[#allocation8 + $0x8] sm:$0x3f] %v75_v24 }
  0x3f   :  { %158 = shalt.err (!%p155_p6)
}
  0x40   :  { %s159_s20 = scalar_lea.hbm %s244_s3, 256 }
  0x41   :  { %p160_p7 = scmp.ne.s32.totalorder %s244_s3, %s159_s20  ;;  %p163_p8 = scmp.lt.u32.totalorder %s159_s20, %s244_s3 }
  0x43   :  { %p165_p9 = pnand %p163_p8, %p160_p7 }
  0x45   :  { %168 = shalt.err (!%p165_p9)
}
  0x46   :  { %87 = dma.vmem_to_hbm [thread:$0]  %s85_s16, 256, %s244_s3, [#allocation7]  }
  0x47   :  { %173 = dma.done.wait [#allocation7], 256  }
  0x48   :  { %174 = vsyncadd [#allocation7], 4294967040 }
  0x49   :  { %91 = vsyncpa [#allocation6], 1 }
  0x4a   :  { %92 = vsyncpa [#allocation7], 1 }

</bundles_post_ra>
